<compile_context>
chip_gen: v6e
topology: v6e:2x2x1
jax: 0.10.0
libtpu: 0.0.40
codegen_flags: <defaults>
</compile_context>

<pallas_src>
import jax
import jax.numpy as jnp
import numpy as np
from jax.experimental import pallas as pl
from jax.experimental.pallas import tpu as pltpu


_TAPS = tuple((dy, dx) for dy in range(3) for dx in range(3))


def _tap_masks(H: int, W: int) -> np.ndarray:
    """(9, 1, H*W) f32 0/1 masks: is tap (dy, dx) in-bounds at flat position p."""
    idx = np.arange(H * W)
    row, col = idx // W, idx % W
    m = np.zeros((9, 1, H * W), np.float32)
    for t, (dy, dx) in enumerate(_TAPS):
        r, c = row + dy - 1, col + dx - 1
        m[t, 0] = ((r >= 0) & (r < H) & (c >= 0) & (c < W)).astype(np.float32)
    return m


def _make_kernel(H: int, W: int, Cin: int, Cmid: int, Cout: int):
    HW = H * W
    # Tap (dy, dx) reads input at flat offset o = (dy-1)*W + (dx-1); with
    # np.roll semantics (out[p] = in[p - shift]) that is shift = -o (mod HW).
    shifts = tuple((-((dy - 1) * W + (dx - 1))) % HW for dy, dx in _TAPS)

    def kernel(x_ref, w1_ref, w2_ref, m_ref, o_ref):
        # x_ref:  (1, Cin, HW)    channel-major input tile (free view of NCHW)
        # w1_ref: (9, Cmid, Cin)  per-tap conv1 weights (VMEM resident)
        # w2_ref: (9, Cout, Cmid) per-tap conv2 weights (VMEM resident)
        # m_ref:  (9, 1, HW)      per-tap 0/1 border masks (VMEM resident)
        # o_ref:  (1, Cout, HW)   lane-dense output tile (already NCHW layout)

        def conv3x3_relu(src, w_ref, cout):
            # "same" 3x3 conv as 9 (cout, cin) @ (cin, HW) MXU matmuls.  Taps
            # are lane rotations (XLU) of the flat tile; positions whose tap
            # falls outside the image (incl. row/column wrap-around from the
            # rotation) are zeroed by the precomputed mask (one VPU multiply).
            acc = jnp.zeros((cout, HW), jnp.float32)
            for t in range(9):
                s = shifts[t]
                if s == 0:
                    tap = src  # centre tap: no shift, mask is all-ones
                else:
                    tap = pltpu.roll(src, shift=s, axis=1) * m_ref[t]
                acc = acc + jnp.dot(w_ref[t], tap,
                                    preferred_element_type=jnp.float32)
            return jnp.maximum(acc, 0.0)  # ReLU, (cout, HW) f32

        x = x_ref[0].astype(jnp.float32)          # (Cin, HW)
        h = conv3x3_relu(x, w1_ref, Cmid)         # intermediate stays in vregs
        y = conv3x3_relu(h, w2_ref, Cout)
        o_ref[0] = y.astype(o_ref.dtype)          # unmasked 256-lane-wide store

    return kernel


def double_conv(x_nchw: jax.Array, w1_oihw: jax.Array, w2_oihw: jax.Array) -> jax.Array:
    """Fused DoubleConv: conv3x3(pad=1, no bias) -> ReLU -> conv3x3 -> ReLU.

    NCHW in / NCHW out.  Weights are PyTorch-layout OIHW (Cout, Cin, 3, 3).
    """
    N, Cin, H, W = x_nchw.shape
    Cmid = w1_oihw.shape[0]
    Cout = w2_oihw.shape[0]
    assert w1_oihw.shape == (Cmid, Cin, 3, 3)
    assert w2_oihw.shape == (Cout, Cmid, 3, 3)
    HW = H * W

    # Host-side layout plumbing (zero kernel cost): per-tap weight slabs,
    # dense channel-major input view, per-tap border masks.
    w1_taps = jnp.transpose(w1_oihw, (2, 3, 0, 1)).reshape(9, Cmid, Cin)
    w2_taps = jnp.transpose(w2_oihw, (2, 3, 0, 1)).reshape(9, Cout, Cmid)
    x_flat = x_nchw.reshape(N, Cin, HW)            # contiguous reshape: free
    masks = jnp.asarray(_tap_masks(H, W))

    y_flat = pl.pallas_call(
        _make_kernel(H, W, Cin, Cmid, Cout),
        out_shape=jax.ShapeDtypeStruct((N, Cout, HW), x_nchw.dtype),
        grid=(N,),
        in_specs=[
            pl.BlockSpec((1, Cin, HW), lambda n: (n, 0, 0)),
            pl.BlockSpec((9, Cmid, Cin), lambda n: (0, 0, 0)),
            pl.BlockSpec((9, Cout, Cmid), lambda n: (0, 0, 0)),
            pl.BlockSpec((9, 1, HW), lambda n: (0, 0, 0)),
        ],
        out_specs=pl.BlockSpec((1, Cout, HW), lambda n: (n, 0, 0)),
        compiler_params=pltpu.CompilerParams(dimension_semantics=("parallel",)),
    )(x_flat, w1_taps, w2_taps, masks)

    return y_flat.reshape(N, Cout, H, W)           # contiguous reshape: free


def _reference(x_nchw, w1_oihw, w2_oihw):
    """Pure-JAX reference (lax conv) for a correctness sanity check."""
    dn = ("NCHW", "OIHW", "NCHW")
    h = jax.lax.conv_general_dilated(x_nchw, w1_oihw, (1, 1), "SAME",
                                     dimension_numbers=dn)
    h = jnp.maximum(h, 0.0)
    y = jax.lax.conv_general_dilated(h, w2_oihw, (1, 1), "SAME",
                                     dimension_numbers=dn)
    return jnp.maximum(y, 0.0)


if __name__ == "__main__":
    # Small shapes consistent with the module's forward.
    batch, c_in, c_mid, c_out = 2, 4, 8, 8
    H = W = 16

    key = jax.random.PRNGKey(0)
    kx, k1, k2 = jax.random.split(key, 3)

    x = jax.random.normal(kx, (batch, c_in, H, W), dtype=jnp.float32)
    # Conv weights (bias=False since group_norm is truthy), init ~ U(-b, b)
    # with b = 1/sqrt(fan_in), matching PyTorch Conv2d default scale.  OIHW.
    b1 = 1.0 / np.sqrt(c_in * 3 * 3)
    b2 = 1.0 / np.sqrt(c_mid * 3 * 3)
    w1 = jax.random.uniform(k1, (c_mid, c_in, 3, 3), jnp.float32, -b1, b1)
    w2 = jax.random.uniform(k2, (c_out, c_mid, 3, 3), jnp.float32, -b2, b2)

    y = jax.block_until_ready(jax.jit(double_conv)(x, w1, w2))
    assert y.shape == (batch, c_out, H, W)

    y_ref = jax.block_until_ready(_reference(x, w1, w2))
    np.testing.assert_allclose(np.asarray(y), np.asarray(y_ref), atol=1e-4, rtol=1e-4)

    print("KERNEL_OK")
</pallas_src>

<mosaic_0001>
module attributes {stable_mosaic.version = 11 : i64} {
  func.func @kernel(%arg0: i32, %arg1: memref<1x4x256xf32, #tpu.memory_space<vmem>>, %arg2: memref<9x8x4xf32, #tpu.memory_space<vmem>>, %arg3: memref<9x8x8xf32, #tpu.memory_space<vmem>>, %arg4: memref<9x1x256xf32, #tpu.memory_space<vmem>>, %arg5: memref<1x8x256xf32, #tpu.memory_space<vmem>>) attributes {dimension_semantics = [#tpu.dimension_semantics<parallel>], iteration_bounds = array<i64: 2>, scalar_prefetch = 0 : i64, scratch_operands = 0 : i64, tpu.core_type = #tpu.core_type<tc>, window_params = [{transform_indices = @transform_0, window_bounds = array<i64: 1, 4, 256>}, {pipeline_mode = #tpu.pipeline_mode<synchronous>, transform_indices = @transform_1, window_bounds = array<i64: 9, 8, 4>}, {pipeline_mode = #tpu.pipeline_mode<synchronous>, transform_indices = @transform_2, window_bounds = array<i64: 9, 8, 8>}, {pipeline_mode = #tpu.pipeline_mode<synchronous>, transform_indices = @transform_3, window_bounds = array<i64: 9, 1, 256>}, {transform_indices = @transform_4, window_bounds = array<i64: 1, 8, 256>}]} {
    %c0 = arith.constant 0 : index
    %c0_0 = arith.constant 0 : index
    %c0_1 = arith.constant 0 : index
    %0 = vector.load %arg1[%c0, %c0_0, %c0_1] : memref<1x4x256xf32, #tpu.memory_space<vmem>>, vector<1x4x256xf32>
    %1 = vector.shape_cast %0 : vector<1x4x256xf32> to vector<4x256xf32>
    %cst = arith.constant 0.000000e+00 : f32
    %2 = vector.broadcast %cst : f32 to vector<8x256xf32>
    %c17_i32 = arith.constant 17 : i32
    %3 = tpu.dynamic_rotate %1 by %c17_i32 dim 1 : vector<4x256xf32>, i32 -> vector<4x256xf32>
    %c0_2 = arith.constant 0 : index
    %c0_3 = arith.constant 0 : index
    %c0_4 = arith.constant 0 : index
    %4 = vector.load %arg4[%c0_2, %c0_3, %c0_4] : memref<9x1x256xf32, #tpu.memory_space<vmem>>, vector<1x1x256xf32>
    %5 = vector.shape_cast %4 : vector<1x1x256xf32> to vector<1x256xf32>
    %6 = vector.broadcast %5 : vector<1x256xf32> to vector<4x256xf32>
    %7 = arith.mulf %3, %6 : vector<4x256xf32>
    %c0_5 = arith.constant 0 : index
    %c0_6 = arith.constant 0 : index
    %c0_7 = arith.constant 0 : index
    %8 = vector.load %arg2[%c0_5, %c0_6, %c0_7] : memref<9x8x4xf32, #tpu.memory_space<vmem>>, vector<1x8x4xf32>
    %9 = vector.shape_cast %8 : vector<1x8x4xf32> to vector<8x4xf32>
    %cst_8 = arith.constant dense<0.000000e+00> : vector<8x256xf32>
    %10 = tpu.matmul %9, %7, %cst_8 {dimension_numbers = #tpu.dot_dimension_numbers<[1], [0], [0], [1], [0, 0, 1, 1], [], []>} : vector<8x4xf32>, vector<4x256xf32>, vector<8x256xf32> -> vector<8x256xf32>
    %11 = arith.addf %2, %10 : vector<8x256xf32>
    %c16_i32 = arith.constant 16 : i32
    %12 = tpu.dynamic_rotate %1 by %c16_i32 dim 1 : vector<4x256xf32>, i32 -> vector<4x256xf32>
    %c1 = arith.constant 1 : index
    %c0_9 = arith.constant 0 : index
    %c0_10 = arith.constant 0 : index
    %13 = vector.load %arg4[%c1, %c0_9, %c0_10] : memref<9x1x256xf32, #tpu.memory_space<vmem>>, vector<1x1x256xf32>
    %14 = vector.shape_cast %13 : vector<1x1x256xf32> to vector<1x256xf32>
    %15 = vector.broadcast %14 : vector<1x256xf32> to vector<4x256xf32>
    %16 = arith.mulf %12, %15 : vector<4x256xf32>
    %c1_11 = arith.constant 1 : index
    %c0_12 = arith.constant 0 : index
    %c0_13 = arith.constant 0 : index
    %17 = vector.load %arg2[%c1_11, %c0_12, %c0_13] : memref<9x8x4xf32, #tpu.memory_space<vmem>>, vector<1x8x4xf32>
    %18 = vector.shape_cast %17 : vector<1x8x4xf32> to vector<8x4xf32>
    %cst_14 = arith.constant dense<0.000000e+00> : vector<8x256xf32>
    %19 = tpu.matmul %18, %16, %cst_14 {dimension_numbers = #tpu.dot_dimension_numbers<[1], [0], [0], [1], [0, 0, 1, 1], [], []>} : vector<8x4xf32>, vector<4x256xf32>, vector<8x256xf32> -> vector<8x256xf32>
    %20 = arith.addf %11, %19 : vector<8x256xf32>
    %c15_i32 = arith.constant 15 : i32
    %21 = tpu.dynamic_rotate %1 by %c15_i32 dim 1 : vector<4x256xf32>, i32 -> vector<4x256xf32>
    %c2 = arith.constant 2 : index
    %c0_15 = arith.constant 0 : index
    %c0_16 = arith.constant 0 : index
    %22 = vector.load %arg4[%c2, %c0_15, %c0_16] : memref<9x1x256xf32, #tpu.memory_space<vmem>>, vector<1x1x256xf32>
    %23 = vector.shape_cast %22 : vector<1x1x256xf32> to vector<1x256xf32>
    %24 = vector.broadcast %23 : vector<1x256xf32> to vector<4x256xf32>
    %25 = arith.mulf %21, %24 : vector<4x256xf32>
    %c2_17 = arith.constant 2 : index
    %c0_18 = arith.constant 0 : index
    %c0_19 = arith.constant 0 : index
    %26 = vector.load %arg2[%c2_17, %c0_18, %c0_19] : memref<9x8x4xf32, #tpu.memory_space<vmem>>, vector<1x8x4xf32>
    %27 = vector.shape_cast %26 : vector<1x8x4xf32> to vector<8x4xf32>
    %cst_20 = arith.constant dense<0.000000e+00> : vector<8x256xf32>
    %28 = tpu.matmul %27, %25, %cst_20 {dimension_numbers = #tpu.dot_dimension_numbers<[1], [0], [0], [1], [0, 0, 1, 1], [], []>} : vector<8x4xf32>, vector<4x256xf32>, vector<8x256xf32> -> vector<8x256xf32>
    %29 = arith.addf %20, %28 : vector<8x256xf32>
    %c1_i32 = arith.constant 1 : i32
    %30 = tpu.dynamic_rotate %1 by %c1_i32 dim 1 : vector<4x256xf32>, i32 -> vector<4x256xf32>
    %c3 = arith.constant 3 : index
    %c0_21 = arith.constant 0 : index
    %c0_22 = arith.constant 0 : index
    %31 = vector.load %arg4[%c3, %c0_21, %c0_22] : memref<9x1x256xf32, #tpu.memory_space<vmem>>, vector<1x1x256xf32>
    %32 = vector.shape_cast %31 : vector<1x1x256xf32> to vector<1x256xf32>
    %33 = vector.broadcast %32 : vector<1x256xf32> to vector<4x256xf32>
    %34 = arith.mulf %30, %33 : vector<4x256xf32>
    %c3_23 = arith.constant 3 : index
    %c0_24 = arith.constant 0 : index
    %c0_25 = arith.constant 0 : index
    %35 = vector.load %arg2[%c3_23, %c0_24, %c0_25] : memref<9x8x4xf32, #tpu.memory_space<vmem>>, vector<1x8x4xf32>
    %36 = vector.shape_cast %35 : vector<1x8x4xf32> to vector<8x4xf32>
    %cst_26 = arith.constant dense<0.000000e+00> : vector<8x256xf32>
    %37 = tpu.matmul %36, %34, %cst_26 {dimension_numbers = #tpu.dot_dimension_numbers<[1], [0], [0], [1], [0, 0, 1, 1], [], []>} : vector<8x4xf32>, vector<4x256xf32>, vector<8x256xf32> -> vector<8x256xf32>
    %38 = arith.addf %29, %37 : vector<8x256xf32>
    %c4 = arith.constant 4 : index
    %c0_27 = arith.constant 0 : index
    %c0_28 = arith.constant 0 : index
    %39 = vector.load %arg2[%c4, %c0_27, %c0_28] : memref<9x8x4xf32, #tpu.memory_space<vmem>>, vector<1x8x4xf32>
    %40 = vector.shape_cast %39 : vector<1x8x4xf32> to vector<8x4xf32>
    %cst_29 = arith.constant dense<0.000000e+00> : vector<8x256xf32>
    %41 = tpu.matmul %40, %1, %cst_29 {dimension_numbers = #tpu.dot_dimension_numbers<[1], [0], [0], [1], [0, 0, 1, 1], [], []>} : vector<8x4xf32>, vector<4x256xf32>, vector<8x256xf32> -> vector<8x256xf32>
    %42 = arith.addf %38, %41 : vector<8x256xf32>
    %c255_i32 = arith.constant 255 : i32
    %43 = tpu.dynamic_rotate %1 by %c255_i32 dim 1 : vector<4x256xf32>, i32 -> vector<4x256xf32>
    %c5 = arith.constant 5 : index
    %c0_30 = arith.constant 0 : index
    %c0_31 = arith.constant 0 : index
    %44 = vector.load %arg4[%c5, %c0_30, %c0_31] : memref<9x1x256xf32, #tpu.memory_space<vmem>>, vector<1x1x256xf32>
    %45 = vector.shape_cast %44 : vector<1x1x256xf32> to vector<1x256xf32>
    %46 = vector.broadcast %45 : vector<1x256xf32> to vector<4x256xf32>
    %47 = arith.mulf %43, %46 : vector<4x256xf32>
    %c5_32 = arith.constant 5 : index
    %c0_33 = arith.constant 0 : index
    %c0_34 = arith.constant 0 : index
    %48 = vector.load %arg2[%c5_32, %c0_33, %c0_34] : memref<9x8x4xf32, #tpu.memory_space<vmem>>, vector<1x8x4xf32>
    %49 = vector.shape_cast %48 : vector<1x8x4xf32> to vector<8x4xf32>
    %cst_35 = arith.constant dense<0.000000e+00> : vector<8x256xf32>
    %50 = tpu.matmul %49, %47, %cst_35 {dimension_numbers = #tpu.dot_dimension_numbers<[1], [0], [0], [1], [0, 0, 1, 1], [], []>} : vector<8x4xf32>, vector<4x256xf32>, vector<8x256xf32> -> vector<8x256xf32>
    %51 = arith.addf %42, %50 : vector<8x256xf32>
    %c241_i32 = arith.constant 241 : i32
    %52 = tpu.dynamic_rotate %1 by %c241_i32 dim 1 : vector<4x256xf32>, i32 -> vector<4x256xf32>
    %c6 = arith.constant 6 : index
    %c0_36 = arith.constant 0 : index
    %c0_37 = arith.constant 0 : index
    %53 = vector.load %arg4[%c6, %c0_36, %c0_37] : memref<9x1x256xf32, #tpu.memory_space<vmem>>, vector<1x1x256xf32>
    %54 = vector.shape_cast %53 : vector<1x1x256xf32> to vector<1x256xf32>
    %55 = vector.broadcast %54 : vector<1x256xf32> to vector<4x256xf32>
    %56 = arith.mulf %52, %55 : vector<4x256xf32>
    %c6_38 = arith.constant 6 : index
    %c0_39 = arith.constant 0 : index
    %c0_40 = arith.constant 0 : index
    %57 = vector.load %arg2[%c6_38, %c0_39, %c0_40] : memref<9x8x4xf32, #tpu.memory_space<vmem>>, vector<1x8x4xf32>
    %58 = vector.shape_cast %57 : vector<1x8x4xf32> to vector<8x4xf32>
    %cst_41 = arith.constant dense<0.000000e+00> : vector<8x256xf32>
    %59 = tpu.matmul %58, %56, %cst_41 {dimension_numbers = #tpu.dot_dimension_numbers<[1], [0], [0], [1], [0, 0, 1, 1], [], []>} : vector<8x4xf32>, vector<4x256xf32>, vector<8x256xf32> -> vector<8x256xf32>
    %60 = arith.addf %51, %59 : vector<8x256xf32>
    %c240_i32 = arith.constant 240 : i32
    %61 = tpu.dynamic_rotate %1 by %c240_i32 dim 1 : vector<4x256xf32>, i32 -> vector<4x256xf32>
    %c7 = arith.constant 7 : index
    %c0_42 = arith.constant 0 : index
    %c0_43 = arith.constant 0 : index
    %62 = vector.load %arg4[%c7, %c0_42, %c0_43] : memref<9x1x256xf32, #tpu.memory_space<vmem>>, vector<1x1x256xf32>
    %63 = vector.shape_cast %62 : vector<1x1x256xf32> to vector<1x256xf32>
    %64 = vector.broadcast %63 : vector<1x256xf32> to vector<4x256xf32>
    %65 = arith.mulf %61, %64 : vector<4x256xf32>
    %c7_44 = arith.constant 7 : index
    %c0_45 = arith.constant 0 : index
    %c0_46 = arith.constant 0 : index
    %66 = vector.load %arg2[%c7_44, %c0_45, %c0_46] : memref<9x8x4xf32, #tpu.memory_space<vmem>>, vector<1x8x4xf32>
    %67 = vector.shape_cast %66 : vector<1x8x4xf32> to vector<8x4xf32>
    %cst_47 = arith.constant dense<0.000000e+00> : vector<8x256xf32>
    %68 = tpu.matmul %67, %65, %cst_47 {dimension_numbers = #tpu.dot_dimension_numbers<[1], [0], [0], [1], [0, 0, 1, 1], [], []>} : vector<8x4xf32>, vector<4x256xf32>, vector<8x256xf32> -> vector<8x256xf32>
    %69 = arith.addf %60, %68 : vector<8x256xf32>
    %c239_i32 = arith.constant 239 : i32
    %70 = tpu.dynamic_rotate %1 by %c239_i32 dim 1 : vector<4x256xf32>, i32 -> vector<4x256xf32>
    %c8 = arith.constant 8 : index
    %c0_48 = arith.constant 0 : index
    %c0_49 = arith.constant 0 : index
    %71 = vector.load %arg4[%c8, %c0_48, %c0_49] : memref<9x1x256xf32, #tpu.memory_space<vmem>>, vector<1x1x256xf32>
    %72 = vector.shape_cast %71 : vector<1x1x256xf32> to vector<1x256xf32>
    %73 = vector.broadcast %72 : vector<1x256xf32> to vector<4x256xf32>
    %74 = arith.mulf %70, %73 : vector<4x256xf32>
    %c8_50 = arith.constant 8 : index
    %c0_51 = arith.constant 0 : index
    %c0_52 = arith.constant 0 : index
    %75 = vector.load %arg2[%c8_50, %c0_51, %c0_52] : memref<9x8x4xf32, #tpu.memory_space<vmem>>, vector<1x8x4xf32>
    %76 = vector.shape_cast %75 : vector<1x8x4xf32> to vector<8x4xf32>
    %cst_53 = arith.constant dense<0.000000e+00> : vector<8x256xf32>
    %77 = tpu.matmul %76, %74, %cst_53 {dimension_numbers = #tpu.dot_dimension_numbers<[1], [0], [0], [1], [0, 0, 1, 1], [], []>} : vector<8x4xf32>, vector<4x256xf32>, vector<8x256xf32> -> vector<8x256xf32>
    %78 = arith.addf %69, %77 : vector<8x256xf32>
    %cst_54 = arith.constant 0.000000e+00 : f32
    %79 = vector.broadcast %cst_54 : f32 to vector<8x256xf32>
    %80 = arith.maximumf %78, %79 : vector<8x256xf32>
    %cst_55 = arith.constant 0.000000e+00 : f32
    %81 = vector.broadcast %cst_55 : f32 to vector<8x256xf32>
    %c17_i32_56 = arith.constant 17 : i32
    %82 = tpu.dynamic_rotate %80 by %c17_i32_56 dim 1 : vector<8x256xf32>, i32 -> vector<8x256xf32>
    %c0_57 = arith.constant 0 : index
    %c0_58 = arith.constant 0 : index
    %c0_59 = arith.constant 0 : index
    %83 = vector.load %arg4[%c0_57, %c0_58, %c0_59] : memref<9x1x256xf32, #tpu.memory_space<vmem>>, vector<1x1x256xf32>
    %84 = vector.shape_cast %83 : vector<1x1x256xf32> to vector<1x256xf32>
    %85 = vector.broadcast %84 : vector<1x256xf32> to vector<8x256xf32>
    %86 = arith.mulf %82, %85 : vector<8x256xf32>
    %c0_60 = arith.constant 0 : index
    %c0_61 = arith.constant 0 : index
    %c0_62 = arith.constant 0 : index
    %87 = vector.load %arg3[%c0_60, %c0_61, %c0_62] : memref<9x8x8xf32, #tpu.memory_space<vmem>>, vector<1x8x8xf32>
    %88 = vector.shape_cast %87 : vector<1x8x8xf32> to vector<8x8xf32>
    %cst_63 = arith.constant dense<0.000000e+00> : vector<8x256xf32>
    %89 = tpu.matmul %88, %86, %cst_63 {dimension_numbers = #tpu.dot_dimension_numbers<[1], [0], [0], [1], [0, 0, 1, 1], [], []>} : vector<8x8xf32>, vector<8x256xf32>, vector<8x256xf32> -> vector<8x256xf32>
    %90 = arith.addf %81, %89 : vector<8x256xf32>
    %c16_i32_64 = arith.constant 16 : i32
    %91 = tpu.dynamic_rotate %80 by %c16_i32_64 dim 1 : vector<8x256xf32>, i32 -> vector<8x256xf32>
    %c1_65 = arith.constant 1 : index
    %c0_66 = arith.constant 0 : index
    %c0_67 = arith.constant 0 : index
    %92 = vector.load %arg4[%c1_65, %c0_66, %c0_67] : memref<9x1x256xf32, #tpu.memory_space<vmem>>, vector<1x1x256xf32>
    %93 = vector.shape_cast %92 : vector<1x1x256xf32> to vector<1x256xf32>
    %94 = vector.broadcast %93 : vector<1x256xf32> to vector<8x256xf32>
    %95 = arith.mulf %91, %94 : vector<8x256xf32>
    %c1_68 = arith.constant 1 : index
    %c0_69 = arith.constant 0 : index
    %c0_70 = arith.constant 0 : index
    %96 = vector.load %arg3[%c1_68, %c0_69, %c0_70] : memref<9x8x8xf32, #tpu.memory_space<vmem>>, vector<1x8x8xf32>
    %97 = vector.shape_cast %96 : vector<1x8x8xf32> to vector<8x8xf32>
    %cst_71 = arith.constant dense<0.000000e+00> : vector<8x256xf32>
    %98 = tpu.matmul %97, %95, %cst_71 {dimension_numbers = #tpu.dot_dimension_numbers<[1], [0], [0], [1], [0, 0, 1, 1], [], []>} : vector<8x8xf32>, vector<8x256xf32>, vector<8x256xf32> -> vector<8x256xf32>
    %99 = arith.addf %90, %98 : vector<8x256xf32>
    %c15_i32_72 = arith.constant 15 : i32
    %100 = tpu.dynamic_rotate %80 by %c15_i32_72 dim 1 : vector<8x256xf32>, i32 -> vector<8x256xf32>
    %c2_73 = arith.constant 2 : index
    %c0_74 = arith.constant 0 : index
    %c0_75 = arith.constant 0 : index
    %101 = vector.load %arg4[%c2_73, %c0_74, %c0_75] : memref<9x1x256xf32, #tpu.memory_space<vmem>>, vector<1x1x256xf32>
    %102 = vector.shape_cast %101 : vector<1x1x256xf32> to vector<1x256xf32>
    %103 = vector.broadcast %102 : vector<1x256xf32> to vector<8x256xf32>
    %104 = arith.mulf %100, %103 : vector<8x256xf32>
    %c2_76 = arith.constant 2 : index
    %c0_77 = arith.constant 0 : index
    %c0_78 = arith.constant 0 : index
    %105 = vector.load %arg3[%c2_76, %c0_77, %c0_78] : memref<9x8x8xf32, #tpu.memory_space<vmem>>, vector<1x8x8xf32>
    %106 = vector.shape_cast %105 : vector<1x8x8xf32> to vector<8x8xf32>
    %cst_79 = arith.constant dense<0.000000e+00> : vector<8x256xf32>
    %107 = tpu.matmul %106, %104, %cst_79 {dimension_numbers = #tpu.dot_dimension_numbers<[1], [0], [0], [1], [0, 0, 1, 1], [], []>} : vector<8x8xf32>, vector<8x256xf32>, vector<8x256xf32> -> vector<8x256xf32>
    %108 = arith.addf %99, %107 : vector<8x256xf32>
    %c1_i32_80 = arith.constant 1 : i32
    %109 = tpu.dynamic_rotate %80 by %c1_i32_80 dim 1 : vector<8x256xf32>, i32 -> vector<8x256xf32>
    %c3_81 = arith.constant 3 : index
    %c0_82 = arith.constant 0 : index
    %c0_83 = arith.constant 0 : index
    %110 = vector.load %arg4[%c3_81, %c0_82, %c0_83] : memref<9x1x256xf32, #tpu.memory_space<vmem>>, vector<1x1x256xf32>
    %111 = vector.shape_cast %110 : vector<1x1x256xf32> to vector<1x256xf32>
    %112 = vector.broadcast %111 : vector<1x256xf32> to vector<8x256xf32>
    %113 = arith.mulf %109, %112 : vector<8x256xf32>
    %c3_84 = arith.constant 3 : index
    %c0_85 = arith.constant 0 : index
    %c0_86 = arith.constant 0 : index
    %114 = vector.load %arg3[%c3_84, %c0_85, %c0_86] : memref<9x8x8xf32, #tpu.memory_space<vmem>>, vector<1x8x8xf32>
    %115 = vector.shape_cast %114 : vector<1x8x8xf32> to vector<8x8xf32>
    %cst_87 = arith.constant dense<0.000000e+00> : vector<8x256xf32>
    %116 = tpu.matmul %115, %113, %cst_87 {dimension_numbers = #tpu.dot_dimension_numbers<[1], [0], [0], [1], [0, 0, 1, 1], [], []>} : vector<8x8xf32>, vector<8x256xf32>, vector<8x256xf32> -> vector<8x256xf32>
    %117 = arith.addf %108, %116 : vector<8x256xf32>
    %c4_88 = arith.constant 4 : index
    %c0_89 = arith.constant 0 : index
    %c0_90 = arith.constant 0 : index
    %118 = vector.load %arg3[%c4_88, %c0_89, %c0_90] : memref<9x8x8xf32, #tpu.memory_space<vmem>>, vector<1x8x8xf32>
    %119 = vector.shape_cast %118 : vector<1x8x8xf32> to vector<8x8xf32>
    %cst_91 = arith.constant dense<0.000000e+00> : vector<8x256xf32>
    %120 = tpu.matmul %119, %80, %cst_91 {dimension_numbers = #tpu.dot_dimension_numbers<[1], [0], [0], [1], [0, 0, 1, 1], [], []>} : vector<8x8xf32>, vector<8x256xf32>, vector<8x256xf32> -> vector<8x256xf32>
    %121 = arith.addf %117, %120 : vector<8x256xf32>
    %c255_i32_92 = arith.constant 255 : i32
    %122 = tpu.dynamic_rotate %80 by %c255_i32_92 dim 1 : vector<8x256xf32>, i32 -> vector<8x256xf32>
    %c5_93 = arith.constant 5 : index
    %c0_94 = arith.constant 0 : index
    %c0_95 = arith.constant 0 : index
    %123 = vector.load %arg4[%c5_93, %c0_94, %c0_95] : memref<9x1x256xf32, #tpu.memory_space<vmem>>, vector<1x1x256xf32>
    %124 = vector.shape_cast %123 : vector<1x1x256xf32> to vector<1x256xf32>
    %125 = vector.broadcast %124 : vector<1x256xf32> to vector<8x256xf32>
    %126 = arith.mulf %122, %125 : vector<8x256xf32>
    %c5_96 = arith.constant 5 : index
    %c0_97 = arith.constant 0 : index
    %c0_98 = arith.constant 0 : index
    %127 = vector.load %arg3[%c5_96, %c0_97, %c0_98] : memref<9x8x8xf32, #tpu.memory_space<vmem>>, vector<1x8x8xf32>
    %128 = vector.shape_cast %127 : vector<1x8x8xf32> to vector<8x8xf32>
    %cst_99 = arith.constant dense<0.000000e+00> : vector<8x256xf32>
    %129 = tpu.matmul %128, %126, %cst_99 {dimension_numbers = #tpu.dot_dimension_numbers<[1], [0], [0], [1], [0, 0, 1, 1], [], []>} : vector<8x8xf32>, vector<8x256xf32>, vector<8x256xf32> -> vector<8x256xf32>
    %130 = arith.addf %121, %129 : vector<8x256xf32>
    %c241_i32_100 = arith.constant 241 : i32
    %131 = tpu.dynamic_rotate %80 by %c241_i32_100 dim 1 : vector<8x256xf32>, i32 -> vector<8x256xf32>
    %c6_101 = arith.constant 6 : index
    %c0_102 = arith.constant 0 : index
    %c0_103 = arith.constant 0 : index
    %132 = vector.load %arg4[%c6_101, %c0_102, %c0_103] : memref<9x1x256xf32, #tpu.memory_space<vmem>>, vector<1x1x256xf32>
    %133 = vector.shape_cast %132 : vector<1x1x256xf32> to vector<1x256xf32>
    %134 = vector.broadcast %133 : vector<1x256xf32> to vector<8x256xf32>
    %135 = arith.mulf %131, %134 : vector<8x256xf32>
    %c6_104 = arith.constant 6 : index
    %c0_105 = arith.constant 0 : index
    %c0_106 = arith.constant 0 : index
    %136 = vector.load %arg3[%c6_104, %c0_105, %c0_106] : memref<9x8x8xf32, #tpu.memory_space<vmem>>, vector<1x8x8xf32>
    %137 = vector.shape_cast %136 : vector<1x8x8xf32> to vector<8x8xf32>
    %cst_107 = arith.constant dense<0.000000e+00> : vector<8x256xf32>
    %138 = tpu.matmul %137, %135, %cst_107 {dimension_numbers = #tpu.dot_dimension_numbers<[1], [0], [0], [1], [0, 0, 1, 1], [], []>} : vector<8x8xf32>, vector<8x256xf32>, vector<8x256xf32> -> vector<8x256xf32>
    %139 = arith.addf %130, %138 : vector<8x256xf32>
    %c240_i32_108 = arith.constant 240 : i32
    %140 = tpu.dynamic_rotate %80 by %c240_i32_108 dim 1 : vector<8x256xf32>, i32 -> vector<8x256xf32>
    %c7_109 = arith.constant 7 : index
    %c0_110 = arith.constant 0 : index
    %c0_111 = arith.constant 0 : index
    %141 = vector.load %arg4[%c7_109, %c0_110, %c0_111] : memref<9x1x256xf32, #tpu.memory_space<vmem>>, vector<1x1x256xf32>
    %142 = vector.shape_cast %141 : vector<1x1x256xf32> to vector<1x256xf32>
    %143 = vector.broadcast %142 : vector<1x256xf32> to vector<8x256xf32>
    %144 = arith.mulf %140, %143 : vector<8x256xf32>
    %c7_112 = arith.constant 7 : index
    %c0_113 = arith.constant 0 : index
    %c0_114 = arith.constant 0 : index
    %145 = vector.load %arg3[%c7_112, %c0_113, %c0_114] : memref<9x8x8xf32, #tpu.memory_space<vmem>>, vector<1x8x8xf32>
    %146 = vector.shape_cast %145 : vector<1x8x8xf32> to vector<8x8xf32>
    %cst_115 = arith.constant dense<0.000000e+00> : vector<8x256xf32>
    %147 = tpu.matmul %146, %144, %cst_115 {dimension_numbers = #tpu.dot_dimension_numbers<[1], [0], [0], [1], [0, 0, 1, 1], [], []>} : vector<8x8xf32>, vector<8x256xf32>, vector<8x256xf32> -> vector<8x256xf32>
    %148 = arith.addf %139, %147 : vector<8x256xf32>
    %c239_i32_116 = arith.constant 239 : i32
    %149 = tpu.dynamic_rotate %80 by %c239_i32_116 dim 1 : vector<8x256xf32>, i32 -> vector<8x256xf32>
    %c8_117 = arith.constant 8 : index
    %c0_118 = arith.constant 0 : index
    %c0_119 = arith.constant 0 : index
    %150 = vector.load %arg4[%c8_117, %c0_118, %c0_119] : memref<9x1x256xf32, #tpu.memory_space<vmem>>, vector<1x1x256xf32>
    %151 = vector.shape_cast %150 : vector<1x1x256xf32> to vector<1x256xf32>
    %152 = vector.broadcast %151 : vector<1x256xf32> to vector<8x256xf32>
    %153 = arith.mulf %149, %152 : vector<8x256xf32>
    %c8_120 = arith.constant 8 : index
    %c0_121 = arith.constant 0 : index
    %c0_122 = arith.constant 0 : index
    %154 = vector.load %arg3[%c8_120, %c0_121, %c0_122] : memref<9x8x8xf32, #tpu.memory_space<vmem>>, vector<1x8x8xf32>
    %155 = vector.shape_cast %154 : vector<1x8x8xf32> to vector<8x8xf32>
    %cst_123 = arith.constant dense<0.000000e+00> : vector<8x256xf32>
    %156 = tpu.matmul %155, %153, %cst_123 {dimension_numbers = #tpu.dot_dimension_numbers<[1], [0], [0], [1], [0, 0, 1, 1], [], []>} : vector<8x8xf32>, vector<8x256xf32>, vector<8x256xf32> -> vector<8x256xf32>
    %157 = arith.addf %148, %156 : vector<8x256xf32>
    %cst_124 = arith.constant 0.000000e+00 : f32
    %158 = vector.broadcast %cst_124 : f32 to vector<8x256xf32>
    %159 = arith.maximumf %157, %158 : vector<8x256xf32>
    %c0_125 = arith.constant 0 : index
    %c0_126 = arith.constant 0 : index
    %c0_127 = arith.constant 0 : index
    %160 = vector.load %arg5[%c0_125, %c0_126, %c0_127] : memref<1x8x256xf32, #tpu.memory_space<vmem>>, vector<1x8x256xf32>
    %161 = vector.shape_cast %160 : vector<1x8x256xf32> to vector<8x256xf32>
    %162 = vector.shape_cast %159 : vector<8x256xf32> to vector<1x8x256xf32>
    tpu.vector_store %arg5[%c0_125, %c0_126, %c0_127], %162 {strides = array<i32>} : memref<1x8x256xf32, #tpu.memory_space<vmem>>, vector<1x8x256xf32>,
    return
  }
  func.func @transform_0(%arg0: i32) -> (i32, i32, i32) {
    %c0_i32 = arith.constant 0 : i32
    %c0_i32_0 = arith.constant 0 : i32
    %c0_i32_1 = arith.constant 0 : i32
    return %arg0, %c0_i32, %c0_i32_0 : i32, i32, i32
  }
  func.func @transform_1(%arg0: i32) -> (i32, i32, i32) {
    %c0_i32 = arith.constant 0 : i32
    %c0_i32_0 = arith.constant 0 : i32
    %c0_i32_1 = arith.constant 0 : i32
    %c0_i32_2 = arith.constant 0 : i32
    return %c0_i32, %c0_i32_0, %c0_i32_1 : i32, i32, i32
  }
  func.func @transform_2(%arg0: i32) -> (i32, i32, i32) {
    %c0_i32 = arith.constant 0 : i32
    %c0_i32_0 = arith.constant 0 : i32
    %c0_i32_1 = arith.constant 0 : i32
    %c0_i32_2 = arith.constant 0 : i32
    return %c0_i32, %c0_i32_0, %c0_i32_1 : i32, i32, i32
  }
  func.func @transform_3(%arg0: i32) -> (i32, i32, i32) {
    %c0_i32 = arith.constant 0 : i32
    %c0_i32_0 = arith.constant 0 : i32
    %c0_i32_1 = arith.constant 0 : i32
    %c0_i32_2 = arith.constant 0 : i32
    return %c0_i32, %c0_i32_0, %c0_i32_1 : i32, i32, i32
  }
  func.func @transform_4(%arg0: i32) -> (i32, i32, i32) {
    %c0_i32 = arith.constant 0 : i32
    %c0_i32_0 = arith.constant 0 : i32
    %c0_i32_1 = arith.constant 0 : i32
    return %arg0, %c0_i32, %c0_i32_0 : i32, i32, i32
  }
}

</mosaic_0001>

<bundles_post_ra>
// kernel: double_conv.1
= control target key start
LH: loop header
LB: loop body
LE: loop exit
PB: predicated region body
PF: predicated region fallthrough
CT: control target
= control target key end

     0   :  { %s2085_s15 = smov 0   ;;  %s2452_s0 = inlined_call_operand.vmem [shape: f32[2,4,256], index: 0, kind: input, shape index: {}]   ;;  %s2453_s1 = inlined_call_operand.vmem [shape: f32[9,8,4], index: 1, kind: input, shape index: {}]   ;;  %s2454_s2 = inlined_call_operand.vmem [shape: f32[9,8,8], index: 2, kind: input, shape index: {}]   ;;  %s2455_s3 = inlined_call_operand.vmem [shape: f32[9,1,256], index: 3, kind: input, shape index: {}]   ;;  %s2456_s4 = inlined_call_operand.vmem [shape: f32[2,8,256], index: 4, kind: output, shape index: {}]  }
   0x1 LB: > { %s1953_s16 = sadd.s32 4294967295, %s2049_s15   ;;  %p1957_p0 = scmp.ge.s32.totalorder %s2049_s15, 1  ;;  %s2049_s15 = sphi %s2085_s15, %s14_s15  }
   0x2   : > { %p162_p1 = scmp.lt.s32.totalorder %s2049_s15, 3 }
   0x4   : > { %p163_p2 = pnand %p1957_p0, %p162_p1 }
   0x5   : > { %p188_p3 = scmp.lt.s32.totalorder (!%p163_p2), %s1953_s16, 1  ;;  %s2052_s21 = smov (!%p163_p2), 17  }
   0x6   : > { %166 = sbr.rel (%p163_p2) target bundleno = 710 (0x2c6), region = 36  ;;  %s2053_s22 = smov (!%p163_p2), 16  }
   0x7   : > { %s2054_s23 = smov (!%p163_p2), 15   ;;  %s2055_s24 = smov (!%p163_p2), 1  }
   0x8   : > { %s2056_s25 = smov (!%p163_p2), 127   ;;  %s2057_s26 = smov (!%p163_p2), 113  }
   0x9   : > { %s2058_s27 = smov (!%p163_p2), 112   ;;  %s2059_s28 = smov (!%p163_p2), 111  }
   0xb   : > { %s2458_s16 = smov (!%p188_p3, %s1953_s16), 1  ;;  %v2051_v1 = vmov 0.0   ;;  %v206_v3 = vlaneseq  ;;  %v211_v8 = vld [vmem:[%s2455_s3] sm:$0x3]  ;;  %v1962_v13 = vld [vmem:[%s2455_s3 + $0x2] sm:$0x3] }
   0xc   : > { %s2023_s17 = sshll.u32 %s2458_s16, 3  ;;  %325 = vmatprep.mubr.f32.mxu0 %v2051_v1  ;;  %405 = vmatprep.mubr.f32.mxu1 %v2051_v1  ;;  %vm254_vm1 = vcmask 1043456   ;;  %v1970_v18 = vld [vmem:[%s2455_s3 + $0x4] sm:$0x3]  ;;  %v1975_v23 = vld [vmem:[%s2455_s3 + $0x6] sm:$0x3] }
   0xd   : > { %s192_s20 = scalar_lea.vmem %s2452_s0, %s2023_s17  ;;  %v214_v4 = vshrl.u32 %v206_v3, 7  ;;  %v2139_v5 = vand.u32 127, %v206_v3  ;;  %v225_v24 = vld [vmem:[%s2453_s1] sm:$0xff]  ;;  %vm250_vm5 = vcmask 31744   ;;  %v1984_v37 = vld [vmem:[%s2455_s3 + $0xa] sm:$0x3] }
   0xe   : > { %v2099_v0 = vld [vmem:[%s192_s20] sm:$0xff]  ;;  %v1963_v38 = vld [vmem:[%s2453_s1 + $0x8] sm:$0xff]  ;;  %v1971_v50 = vld [vmem:[%s2453_s1 + $0x10] sm:$0xff]  ;;  %vm1151_vm10 = vcmask 64512   ;;  %s2024_s17 = sshll.u32 %s2458_s16, 4 }
   0xf   : > { %202 = vrot.lane.b32.xlu1 %v2099_v0, %s2052_s21  ;;  %226 = vrot.lane.b32.xlu0 %v2099_v0, %s2053_s22  ;;  %v2108_v2 = vcombine.high %v2099_v0, %v2099_v0  ;;  %v2141_v6 = vsub.s32 0, %v214_v4  ;;  %v2143_v7 = vsub.s32 1, %v214_v4  ;;  %vm208_vm0 = vcmp.lt.s32.totalorder %v2139_v5, 17  ;;  %v1989_v49 = vld [vmem:[%s2455_s3 + $0xc] sm:$0x3]  ;;  %v1976_v51 = vld [vmem:[%s2453_s1 + $0x18] sm:$0xff]  ;;  %s197_s20 = scalar_lea.vmem %s2456_s4, %s2024_s17 }
  0x10   : > { %vm416_vm2 = vcmp.lt.s32.totalorder %v2139_v5, 15  ;;  %vm230_vm3 = vcmp.lt.s32.totalorder %v2139_v5, 16  ;;  %vm522_vm4 = vcmp.lt.s32.totalorder %v2139_v5, 1  ;;  %vm710_vm6 = vcmp.lt.s32.totalorder %v2139_v5, 127  ;;  %v1994_v60 = vld [vmem:[%s2455_s3 + $0xe] sm:$0x3] }
  0x11   : > { %v2150_v11 = vrot.slane %v211_v8, %v2141_v6  ;;  %v2153_v12 = vrot.slane %v211_v8, %v2143_v7  ;;  %v2170_v21 = vrot.slane %v1962_v13, %v2141_v6  ;;  %v2173_v22 = vrot.slane %v1962_v13, %v2143_v7  ;;  %v1980_v61 = vld [vmem:[%s2453_s1 + $0x20] sm:$0xff]  ;;  %v1985_v62 = vld [vmem:[%s2453_s1 + $0x28] sm:$0xff]  ;;  %v1990_v13 = vld [vmem:[%s2453_s1 + $0x30] sm:$0xff] }
  0x12   : > { %v2183_v25 = vrot.slane %v1970_v18, %v2141_v6  ;;  %v2186_v26 = vrot.slane %v1970_v18, %v2143_v7  ;;  %v2197_v32 = vrot.slane %v1975_v23, %v2141_v6  ;;  %v2204_v36 = vrot.slane %v1975_v23, %v2143_v7 }
  0x13   : > { %412 = vrot.lane.b32.xlu0 %v2099_v0, %s2054_s23  ;;  %204 = vrot.lane.b32.xlu1 %v2108_v2, %s2052_s21  ;;  %v2223_v45 = vrot.slane %v1984_v37, %v2141_v6  ;;  %v2231_v48 = vrot.slane %v1984_v37, %v2143_v7  ;;  %v2253_v56 = vrot.slane %v1989_v49, %v2141_v6  ;;  %vm816_vm7 = vcmp.lt.s32.totalorder %v2139_v5, 113 }
  0x14   : > { %v2261_v59 = vrot.slane %v1989_v49, %v2143_v7  ;;  %v2283_v4 = vrot.slane %v1994_v60, %v2141_v6  ;;  %vm922_vm8 = vcmp.lt.s32.totalorder %v2139_v5, 112  ;;  %vm1028_vm9 = vcmp.lt.s32.totalorder %v2139_v5, 111 }
  0x17   : > { %414 = vrot.lane.b32.xlu1 %v2108_v2, %s2054_s23  ;;  %228 = vrot.lane.b32.xlu0 %v2108_v2, %s2053_s22 }
  0x1b   : > { %520 = vrot.lane.b32.xlu1 %v2108_v2, %s2055_s24  ;;  %518 = vrot.lane.b32.xlu0 %v2099_v0, %s2055_s24 }
  0x1f   : > { %708 = vrot.lane.b32.xlu1 %v2108_v2, %s2056_s25  ;;  %706 = vrot.lane.b32.xlu0 %v2099_v0, %s2056_s25 }
  0x23   : > { %814 = vrot.lane.b32.xlu1 %v2108_v2, %s2057_s26  ;;  %812 = vrot.lane.b32.xlu0 %v2099_v0, %s2057_s26 }
  0x27   : > { %920 = vrot.lane.b32.xlu1 %v2108_v2, %s2058_s27  ;;  %918 = vrot.lane.b32.xlu0 %v2099_v0, %s2058_s27 }
  0x2b   : > { %1026 = vrot.lane.b32.xlu1 %v2108_v2, %s2059_s28  ;;  %1024 = vrot.lane.b32.xlu0 %v2099_v0, %s2059_s28 }
  0x81   : > { %v203_v9 = vpop.permute.xlu1 %202  ;;  %v227_v10 = vpop.permute.xlu0 %226 }
  0x85   : > { %v413_v14 = vpop.permute.xlu0 %412  ;;  %v205_v15 = vpop.permute.xlu1 %204 }
  0x86   : > { %v209_v16 = vsel %vm208_vm0, %v203_v9, %v205_v15  ;;  %v210_v17 = vsel %vm208_vm0, %v205_v15, %v203_v9 }
  0x87   : > { %v223_v19 = vmul.f32 %v2150_v11, %v210_v17  ;;  %v224_v20 = vmul.f32 %v2153_v12, %v209_v16 }
  0x89   : > { %1967 = vmatprep.subr.msk.mxu1 %vm254_vm1, %v224_v20  ;;  %v415_v27 = vpop.permute.xlu1 %414  ;;  %v229_v28 = vpop.permute.xlu0 %228 }
  0x8a   : > { %v417_v29 = vsel %vm416_vm2, %v413_v14, %v415_v27  ;;  %v231_v30 = vsel %vm230_vm3, %v227_v10, %v229_v28  ;;  %v232_v31 = vsel %vm230_vm3, %v229_v28, %v227_v10  ;;  %1968 = vmatpush1.msk.msra.mxu1 %vm254_vm1, %v223_v19  ;;  %v418_v33 = vsel %vm416_vm2, %v415_v27, %v413_v14  ;;  %v1999_v14 = vld [vmem:[%s2455_s3 + $0x10] sm:$0x3]  ;;  %v1995_v27 = vld [vmem:[%s2453_s1 + $0x38] sm:$0xff] }
  0x8b   : > { %v246_v34 = vmul.f32 %v2170_v21, %v232_v31  ;;  %v247_v35 = vmul.f32 %v2173_v22, %v231_v30  ;;  %1969 = vmatmul.mubr.msk.f32.vlgmr.msra.gmra.mxu1 %vm250_vm5, %v225_v24  ;;  %v433_v39 = vmul.f32 %v2186_v26, %v417_v29  ;;  %v432_v42 = vmul.f32 %v2183_v25, %v418_v33  ;;  %v2000_v33 = vld [vmem:[%s2453_s1 + $0x40] sm:$0xff] }
  0x8c   : > { %615 = vmatprep.mubr.f32.mxu1 %v2051_v1  ;;  %v2291_v10 = vrot.slane %v1994_v60, %v2143_v7  ;;  %v2312_v23 = vrot.slane %v1999_v14, %v2141_v6  ;;  %v2315_v24 = vrot.slane %v1999_v14, %v2143_v7 }
  0x8d   : > { %v521_v40 = vpop.permute.xlu1 %520  ;;  %1964 = vmatprep.subr.msk.mxu0 %vm254_vm1, %v247_v35  ;;  %v519_v41 = vpop.permute.xlu0 %518 }
  0x8e   : > { %v523_v43 = vsel %vm522_vm4, %v519_v41, %v521_v40  ;;  %v524_v44 = vsel %vm522_vm4, %v521_v40, %v519_v41  ;;  %1965 = vmatpush1.msk.msra.mxu0 %vm254_vm1, %v246_v34 }
  0x8f   : > { %v538_v46 = vmul.f32 %v2197_v32, %v524_v44  ;;  %v539_v47 = vmul.f32 %v2204_v36, %v523_v43  ;;  %1966 = vmatmul.mubr.msk.f32.vlgmr.msra.gmra.mxu0 %vm250_vm5, %v1963_v38  ;;  %1972 = vmatprep.subr.msk.mxu0 %vm254_vm1, %v433_v39 }
  0x90   : > { %1973 = vmatpush1.msk.msra.mxu0 %vm254_vm1, %v432_v42  ;;  %509 = vmatprep.mubr.f32.mxu0 %v2051_v1 }
  0x91   : > { %v709_v52 = vpop.permute.xlu1 %708  ;;  %1977 = vmatprep.subr.msk.mxu1 %vm254_vm1, %v539_v47  ;;  %v707_v53 = vpop.permute.xlu0 %706  ;;  %1981 = vmatprep.subr.msk.mxu0 %vm254_vm1, %v2108_v2 }
  0x92   : > { %v711_v54 = vsel %vm710_vm6, %v707_v53, %v709_v52  ;;  %v712_v55 = vsel %vm710_vm6, %v709_v52, %v707_v53  ;;  %1978 = vmatpush1.msk.msra.mxu1 %vm254_vm1, %v538_v46 }
  0x93   : > { %v726_v57 = vmul.f32 %v2223_v45, %v711_v54  ;;  %v727_v58 = vmul.f32 %v2231_v48, %v712_v55  ;;  %1974 = vmatmul.mubr.msk.f32.vlgmr.msra.gmra.mxu0 %vm250_vm5, %v1971_v50  ;;  %1979 = vmatmul.mubr.msk.f32.vlgmr.msra.gmra.mxu1 %vm250_vm5, %v1976_v51 }
  0x94   : > { %1982 = vmatpush1.msk.msra.mxu0 %vm254_vm1, %v2099_v0  ;;  %697 = vmatprep.mubr.f32.mxu0 %v2051_v1 }
  0x95   : > { %v815_v63 = vpop.permute.xlu1 %814  ;;  %1986 = vmatprep.subr.msk.mxu1 %vm254_vm1, %v727_v58  ;;  %v813_v2 = vpop.permute.xlu0 %812  ;;  %803 = vmatprep.mubr.f32.mxu1 %v2051_v1 }
  0x96   : > { %v817_v3 = vsel %vm816_vm7, %v813_v2, %v815_v63  ;;  %v818_v0 = vsel %vm816_vm7, %v815_v63, %v813_v2  ;;  %1987 = vmatpush1.msk.msra.mxu1 %vm254_vm1, %v726_v57 }
  0x97   : > { %v832_v8 = vmul.f32 %v2253_v56, %v817_v3  ;;  %v833_v9 = vmul.f32 %v2261_v59, %v818_v0  ;;  %1983 = vmatmul.mubr.msk.f32.vlgmr.msra.gmra.mxu0 %vm250_vm5, %v1980_v61  ;;  %1988 = vmatmul.mubr.msk.f32.vlgmr.msra.gmra.mxu1 %vm250_vm5, %v1985_v62 }
  0x98   : > { %909 = vmatprep.mubr.f32.mxu0 %v2051_v1  ;;  %1015 = vmatprep.mubr.f32.mxu1 %v2051_v1 }
  0x99   : > { %v921_v15 = vpop.permute.xlu1 %920  ;;  %1991 = vmatprep.subr.msk.mxu0 %vm254_vm1, %v833_v9  ;;  %v919_v16 = vpop.permute.xlu0 %918 }
  0x9a   : > { %v923_v17 = vsel %vm922_vm8, %v919_v16, %v921_v15  ;;  %v924_v18 = vsel %vm922_vm8, %v921_v15, %v919_v16  ;;  %1992 = vmatpush1.msk.msra.mxu0 %vm254_vm1, %v832_v8 }
  0x9b   : > { %v938_v19 = vmul.f32 %v2283_v4, %v923_v17  ;;  %v939_v20 = vmul.f32 %v2291_v10, %v924_v18  ;;  %1993 = vmatmul.mubr.msk.f32.vlgmr.msra.gmra.mxu0 %vm250_vm5, %v1990_v13 }
  0x9c   : > { %1121 = vmatprep.mubr.f32.mxu0 %v2051_v1 }
  0x9d   : > { %v1027_v28 = vpop.permute.xlu1 %1026  ;;  %1996 = vmatprep.subr.msk.mxu1 %vm254_vm1, %v939_v20  ;;  %v1025_v29 = vpop.permute.xlu0 %1024 }
  0x9e   : > { %v1029_v30 = vsel %vm1028_vm9, %v1025_v29, %v1027_v28  ;;  %v1030_v6 = vsel %vm1028_vm9, %v1027_v28, %v1025_v29  ;;  %1997 = vmatpush1.msk.msra.mxu1 %vm254_vm1, %v938_v19 }
  0x9f   : > { %v1044_v7 = vmul.f32 %v2312_v23, %v1029_v30  ;;  %v1045_v31 = vmul.f32 %v2315_v24, %v1030_v6  ;;  %1998 = vmatmul.mubr.msk.f32.vlgmr.msra.gmra.mxu1 %vm250_vm5, %v1995_v27 }
  0xa0   : > { %1219 = vmatprep.mubr.f32.mxu1 %v2051_v1 }
  0xa1   : > { %2001 = vmatprep.subr.msk.mxu0 %vm254_vm1, %v1045_v31 }
  0xa2   : > { %2002 = vmatpush1.msk.msra.mxu0 %vm254_vm1, %v1044_v7  ;;  %v2004_v7 = vld [vmem:[%s2454_s2 + $0x8] sm:$0xff] }
  0xa3   : > { %2003 = vmatmul.mubr.msk.f32.vlgmr.msra.gmra.mxu0 %vm250_vm5, %v2000_v33 }
  0xa4   : > { %1293 = vmatprep.mubr.f32.mxu0 %v2051_v1 }
 0x14b   : > { %v407_v34 = vpop.f32.mrf.mxu1 }
 0x14d   : > { %v409_v37 = vpop.f32.mrf.mxu1 }
 0x14f   : > { %v327_v35 = vpop.f32.mrf.mxu0 }
 0x150   : > { %v408_v38 = vadd.f32 %v407_v34, %v327_v35 }
 0x151   : > { %v329_v39 = vpop.f32.mrf.mxu0 }
 0x152   : > { %v410_v40 = vadd.f32 %v409_v37, %v329_v39  ;;  %v1140_v37 = vld [vmem:[%s2454_s2] sm:$0xff] }
 0x153   : > { %v511_v41 = vpop.f32.mrf.mxu0  ;;  %v617_v42 = vpop.f32.mrf.mxu1 }
 0x154   : > { %v516_v43 = vadd.f32 %v511_v41, %v408_v38 }
 0x155   : > { %v513_v44 = vpop.f32.mrf.mxu0  ;;  %v619_v46 = vpop.f32.mrf.mxu1 }
 0x156   : > { %v517_v47 = vadd.f32 %v513_v44, %v410_v40  ;;  %v622_v49 = vadd.f32 %v617_v42, %v516_v43  ;;  %v2007_v42 = vld [vmem:[%s2454_s2 + $0x10] sm:$0xff] }
 0x157   : > { %v699_v50 = vpop.f32.mrf.mxu0  ;;  %v805_v51 = vpop.f32.mrf.mxu1 }
 0x158   : > { %v623_v52 = vadd.f32 %v619_v46, %v517_v47  ;;  %v704_v53 = vadd.f32 %v699_v50, %v622_v49  ;;  %v2009_v49 = vld [vmem:[%s2454_s2 + $0x18] sm:$0xff]  ;;  %v2011_v50 = vld [vmem:[%s2454_s2 + $0x20] sm:$0xff] }
 0x159   : > { %v701_v54 = vpop.f32.mrf.mxu0  ;;  %v807_v58 = vpop.f32.mrf.mxu1 }
 0x15a   : > { %v705_v55 = vadd.f32 %v701_v54, %v623_v52  ;;  %v810_v57 = vadd.f32 %v805_v51, %v704_v53 }
 0x15b   : > { %v911_v60 = vpop.f32.mrf.mxu0 }
 0x15c   : > { %v811_v61 = vadd.f32 %v807_v58, %v705_v55  ;;  %v916_v62 = vadd.f32 %v911_v60, %v810_v57  ;;  %v2013_v55 = vld [vmem:[%s2454_s2 + $0x28] sm:$0xff] }
 0x15d   : > { %v913_v63 = vpop.f32.mrf.mxu0 }
 0x15e   : > { %v917_v0 = vadd.f32 %v913_v63, %v811_v61 }
 0x15f   : > { %v1017_v2 = vpop.f32.mrf.mxu1 }
 0x160   : > { %v1022_v8 = vadd.f32 %v1017_v2, %v916_v62  ;;  %v2015_v62 = vld [vmem:[%s2454_s2 + $0x30] sm:$0xff] }
 0x161   : > { %v1019_v3 = vpop.f32.mrf.mxu1 }
 0x162   : > { %v1023_v13 = vadd.f32 %v1019_v3, %v917_v0  ;;  %v2017_v0 = vld [vmem:[%s2454_s2 + $0x38] sm:$0xff] }
 0x163   : > { %v1123_v9 = vpop.f32.mrf.mxu0 }
 0x164   : > { %v1128_v14 = vadd.f32 %v1123_v9, %v1022_v8 }
 0x165   : > { %v1125_v15 = vpop.f32.mrf.mxu0 }
 0x166   : > { %v1130_v16 = vmax.f32 %v1128_v14, 0.0  ;;  %v1129_v17 = vadd.f32 %v1125_v15, %v1023_v13 }
 0x168   : > { %v1131_v18 = vmax.f32 %v1129_v17, 0.0  ;;  %1141 = vrot.lane.b32.xlu0 %v1130_v16, %s2053_s22 }
 0x16a   : > { %1143 = vrot.lane.b32.xlu1 %v1131_v18, %s2053_s22 }
 0x16c   : > { %1132 = vrot.lane.b32.xlu0 %v1130_v16, %s2052_s21 }
 0x16e   : > { %1134 = vrot.lane.b32.xlu1 %v1131_v18, %s2052_s21 }
 0x170   : > { %1300 = vrot.lane.b32.xlu0 %v1130_v16, %s2054_s23 }
 0x172   : > { %1302 = vrot.lane.b32.xlu1 %v1131_v18, %s2054_s23 }
 0x174   : > { %1386 = vrot.lane.b32.xlu0 %v1130_v16, %s2055_s24 }
 0x176   : > { %1388 = vrot.lane.b32.xlu1 %v1131_v18, %s2055_s24 }
 0x178   : > { %1550 = vrot.lane.b32.xlu0 %v1130_v16, %s2056_s25 }
 0x17a   : > { %1552 = vrot.lane.b32.xlu1 %v1131_v18, %s2056_s25 }
 0x17c   : > { %1636 = vrot.lane.b32.xlu0 %v1130_v16, %s2057_s26 }
 0x17e   : > { %1638 = vrot.lane.b32.xlu1 %v1131_v18, %s2057_s26 }
 0x180   : > { %1722 = vrot.lane.b32.xlu0 %v1130_v16, %s2058_s27 }
 0x182   : > { %1724 = vrot.lane.b32.xlu1 %v1131_v18, %s2058_s27 }
 0x184   : > { %1808 = vrot.lane.b32.xlu0 %v1130_v16, %s2059_s28 }
 0x186   : > { %1810 = vrot.lane.b32.xlu1 %v1131_v18, %s2059_s28 }
 0x1da   : > { %v1142_v19 = vpop.permute.xlu0 %1141 }
 0x1dc   : > { %v1144_v20 = vpop.permute.xlu1 %1143 }
 0x1dd   : > { %v1145_v27 = vsel %vm230_vm3, %v1142_v19, %v1144_v20  ;;  %v1146_v28 = vsel %vm230_vm3, %v1144_v20, %v1142_v19 }
 0x1de   : > { %v1147_v29 = vmul.f32 %v1146_v28, %v2170_v21  ;;  %v1148_v30 = vmul.f32 %v1145_v27, %v2173_v22  ;;  %v1133_v6 = vpop.permute.xlu0 %1132 }
 0x1e0   : > { %1185 = vmatprep.subr.mxu1 %v1148_v30  ;;  %v1135_v31 = vpop.permute.xlu1 %1134 }
 0x1e1   : > { %v1136_v33 = vsel %vm208_vm0, %v1133_v6, %v1135_v31  ;;  %v1137_v34 = vsel %vm208_vm0, %v1135_v31, %v1133_v6  ;;  %1186 = vmatpush1.msra.mxu1 %v1147_v29 }
 0x1e2   : > { %v1138_v35 = vmul.f32 %v1137_v34, %v2150_v11  ;;  %v1139_v21 = vmul.f32 %v1136_v33, %v2153_v12  ;;  %v1301_v22 = vpop.permute.xlu0 %1300  ;;  %2005 = vmatmul.mubr.msk.f32.vlgmr.msra.gmra.mxu1 %vm1151_vm10, %v2004_v7 }
 0x1e3   : > { %1377 = vmatprep.mubr.f32.mxu1 %v2051_v1 }
 0x1e4   : > { %1259 = vmatprep.subr.mxu0 %v1139_v21  ;;  %v1303_v38 = vpop.permute.xlu1 %1302 }
 0x1e5   : > { %v1304_v39 = vsel %vm416_vm2, %v1301_v22, %v1303_v38  ;;  %v1305_v40 = vsel %vm416_vm2, %v1303_v38, %v1301_v22  ;;  %1260 = vmatpush1.msra.mxu0 %v1138_v35 }
 0x1e6   : > { %v1306_v11 = vmul.f32 %v1305_v40, %v2183_v25  ;;  %v1307_v12 = vmul.f32 %v1304_v39, %v2186_v26  ;;  %v1387_v41 = vpop.permute.xlu0 %1386  ;;  %2006 = vmatmul.mubr.msk.f32.vlgmr.msra.gmra.mxu0 %vm1151_vm10, %v1140_v37 }
 0x1e7   : > { %1463 = vmatprep.mubr.f32.mxu0 %v2051_v1 }
 0x1e8   : > { %1343 = vmatprep.subr.mxu1 %v1307_v12  ;;  %v1389_v43 = vpop.permute.xlu1 %1388 }
 0x1e9   : > { %v1390_v44 = vsel %vm522_vm4, %v1387_v41, %v1389_v43  ;;  %v1391_v46 = vsel %vm522_vm4, %v1389_v43, %v1387_v41  ;;  %1344 = vmatpush1.msra.mxu1 %v1306_v11 }
 0x1ea   : > { %v1392_v25 = vmul.f32 %v1391_v46, %v2197_v32  ;;  %v1393_v26 = vmul.f32 %v1390_v44, %v2204_v36  ;;  %v1551_v47 = vpop.permute.xlu0 %1550  ;;  %1507 = vmatprep.subr.mxu1 %v1131_v18  ;;  %2008 = vmatmul.mubr.msk.f32.vlgmr.msra.gmra.mxu1 %vm1151_vm10, %v2007_v42 }
 0x1eb   : > { %1508 = vmatpush1.msra.mxu1 %v1130_v16  ;;  %1541 = vmatprep.mubr.f32.mxu1 %v2051_v1 }
 0x1ec   : > { %1429 = vmatprep.subr.mxu0 %v1393_v26  ;;  %v1553_v51 = vpop.permute.xlu1 %1552 }
 0x1ed   : > { %v1554_v32 = vsel %vm710_vm6, %v1551_v47, %v1553_v51  ;;  %v1555_v36 = vsel %vm710_vm6, %v1553_v51, %v1551_v47  ;;  %1430 = vmatpush1.msra.mxu0 %v1392_v25 }
 0x1ee   : > { %v1556_v52 = vmul.f32 %v1554_v32, %v2223_v45  ;;  %v1557_v53 = vmul.f32 %v1555_v36, %v2231_v48  ;;  %v1637_v54 = vpop.permute.xlu0 %1636  ;;  %2010 = vmatmul.mubr.msk.f32.vlgmr.msra.gmra.mxu0 %vm1151_vm10, %v2009_v49  ;;  %2012 = vmatmul.mubr.msk.f32.vlgmr.msra.gmra.mxu1 %vm1151_vm10, %v2011_v50 }
 0x1ef   : > { %1627 = vmatprep.mubr.f32.mxu0 %v2051_v1  ;;  %1713 = vmatprep.mubr.f32.mxu1 %v2051_v1 }
 0x1f0   : > { %1593 = vmatprep.subr.mxu0 %v1557_v53  ;;  %v1639_v57 = vpop.permute.xlu1 %1638 }
 0x1f1   : > { %v1640_v45 = vsel %vm816_vm7, %v1637_v54, %v1639_v57  ;;  %v1641_v48 = vsel %vm816_vm7, %v1639_v57, %v1637_v54  ;;  %1594 = vmatpush1.msra.mxu0 %v1556_v52 }
 0x1f2   : > { %v1642_v58 = vmul.f32 %v1640_v45, %v2253_v56  ;;  %v1643_v60 = vmul.f32 %v1641_v48, %v2261_v59  ;;  %v1723_v61 = vpop.permute.xlu0 %1722  ;;  %2014 = vmatmul.mubr.msk.f32.vlgmr.msra.gmra.mxu0 %vm1151_vm10, %v2013_v55 }
 0x1f3   : > { %1799 = vmatprep.mubr.f32.mxu0 %v2051_v1 }
 0x1f4   : > { %1679 = vmatprep.subr.mxu1 %v1643_v60  ;;  %v1725_v63 = vpop.permute.xlu1 %1724 }
 0x1f5   : > { %v1726_v2 = vsel %vm922_vm8, %v1723_v61, %v1725_v63  ;;  %v1727_v3 = vsel %vm922_vm8, %v1725_v63, %v1723_v61  ;;  %1680 = vmatpush1.msra.mxu1 %v1642_v58 }
 0x1f6   : > { %v1728_v56 = vmul.f32 %v1726_v2, %v2283_v4  ;;  %v1729_v59 = vmul.f32 %v1727_v3, %v2291_v10  ;;  %2016 = vmatmul.mubr.msk.f32.vlgmr.msra.gmra.mxu1 %vm1151_vm10, %v2015_v62  ;;  %v1809_v8 = vpop.permute.xlu0 %1808 }
 0x1f7   : > { %1885 = vmatprep.mubr.f32.mxu1 %v2051_v1  ;;  %v2019_v1 = vld [vmem:[%s2454_s2 + $0x40] sm:$0xff] }
 0x1f8   : > { %1765 = vmatprep.subr.mxu0 %v1729_v59  ;;  %v1811_v9 = vpop.permute.xlu1 %1810 }
 0x1f9   : > { %v1812_v13 = vsel %vm1028_vm9, %v1809_v8, %v1811_v9  ;;  %v1813_v14 = vsel %vm1028_vm9, %v1811_v9, %v1809_v8  ;;  %1766 = vmatpush1.msra.mxu0 %v1728_v56 }
 0x1fa   : > { %v1814_v4 = vmul.f32 %v1812_v13, %v2312_v23  ;;  %v1815_v10 = vmul.f32 %v1813_v14, %v2315_v24  ;;  %2018 = vmatmul.mubr.msk.f32.vlgmr.msra.gmra.mxu0 %vm1151_vm10, %v2017_v0 }
 0x1fc   : > { %1851 = vmatprep.subr.mxu1 %v1815_v10 }
 0x1fd   : > { %1852 = vmatpush1.msra.mxu1 %v1814_v4 }
 0x1fe   : > { %2020 = vmatmul.mubr.msk.f32.vlgmr.msra.gmra.mxu1 %vm1151_vm10, %v2019_v1 }
 0x2a2   : > { %v1221_v15 = vpop.f32.mrf.mxu1 }
 0x2a4   : > { %v1223_v16 = vpop.f32.mrf.mxu1 }
 0x2a6   : > { %v1295_v17 = vpop.f32.mrf.mxu0 }
 0x2a7   : > { %v1296_v5 = vadd.f32 %v1295_v17, %v1221_v15 }
 0x2a8   : > { %v1297_v18 = vpop.f32.mrf.mxu0 }
 0x2a9   : > { %v1298_v19 = vadd.f32 %v1297_v18, %v1223_v16 }
 0x2aa   : > { %v1379_v20 = vpop.f32.mrf.mxu1 }
 0x2ab   : > { %v1384_v23 = vadd.f32 %v1379_v20, %v1296_v5 }
 0x2ac   : > { %v1381_v27 = vpop.f32.mrf.mxu1 }
 0x2ad   : > { %v1385_v24 = vadd.f32 %v1381_v27, %v1298_v19 }
 0x2ae   : > { %v1465_v28 = vpop.f32.mrf.mxu0  ;;  %v1543_v29 = vpop.f32.mrf.mxu1 }
 0x2af   : > { %v1470_v30 = vadd.f32 %v1465_v28, %v1384_v23 }
 0x2b0   : > { %v1467_v6 = vpop.f32.mrf.mxu0  ;;  %v1545_v33 = vpop.f32.mrf.mxu1 }
 0x2b1   : > { %v1471_v7 = vadd.f32 %v1467_v6, %v1385_v24  ;;  %v1548_v31 = vadd.f32 %v1543_v29, %v1470_v30 }
 0x2b2   : > { %v1629_v34 = vpop.f32.mrf.mxu0 }
 0x2b3   : > { %v1549_v35 = vadd.f32 %v1545_v33, %v1471_v7  ;;  %v1634_v21 = vadd.f32 %v1629_v34, %v1548_v31 }
 0x2b4   : > { %v1631_v22 = vpop.f32.mrf.mxu0 }
 0x2b5   : > { %v1635_v38 = vadd.f32 %v1631_v22, %v1549_v35 }
 0x2b6   : > { %v1715_v37 = vpop.f32.mrf.mxu1 }
 0x2b7   : > { %v1720_v39 = vadd.f32 %v1715_v37, %v1634_v21 }
 0x2b8   : > { %v1717_v40 = vpop.f32.mrf.mxu1 }
 0x2b9   : > { %v1721_v41 = vadd.f32 %v1717_v40, %v1635_v38 }
 0x2ba   : > { %v1801_v11 = vpop.f32.mrf.mxu0 }
 0x2bb   : > { %v1806_v42 = vadd.f32 %v1801_v11, %v1720_v39 }
 0x2bc   : > { %v1803_v12 = vpop.f32.mrf.mxu0 }
 0x2bd   : > { %v1807_v44 = vadd.f32 %v1803_v12, %v1721_v41 }
 0x2be   : > { %v1887_v43 = vpop.f32.mrf.mxu1 }
 0x2bf   : > { %v1892_v46 = vadd.f32 %v1887_v43, %v1806_v42 }
 0x2c0   : > { %v1889_v25 = vpop.f32.mrf.mxu1 }
 0x2c1   : > { %v1894_v26 = vmax.f32 %v1892_v46, 0.0  ;;  %v1893_v47 = vadd.f32 %v1889_v25, %v1807_v44 }
 0x2c3   : > { %1896 = vst [vmem:[%s197_s20] sm:$0xff] %v1894_v26  ;;  %v1895_v49 = vmax.f32 %v1893_v47, 0.0 }
 0x2c5   : > { %1897 = vst [vmem:[%s197_s20 + $0x8] sm:$0xff] %v1895_v49 }
 0x2c6 PF: > { %s14_s15 = sadd.s32 1, %s2049_s15  }
 0x2c7   : > { %p11_p4 = scmp.ge.s32.totalorder %s14_s15, 4  }
 0x2c9   :  { %13 = sbr.rel (!%p11_p4) target bundleno = 1 (0x1), region = 89 }

</bundles_post_ra>
